<compile_context>
chip_gen: v7x
topology: tpu7x:2x2x1
jax: 0.10.0
libtpu: 0.0.40
codegen_flags: <defaults>
</compile_context>

<pallas_src>
import jax
import jax.numpy as jnp
from jax.experimental import pallas as pl
from jax.experimental.pallas import tpu as pltpu


def _round_up(x: int, m: int) -> int:
    return ((x + m - 1) // m) * m


def _target_tiles() -> tuple[int, int, int]:
    """Generation-aware (TM, TN, TK) tile targets.

    v5e : 128-wide MXU, small default scoped VMEM -> modest tiles.
    v6e : 256-wide MXU, 128 MiB VMEM              -> wider N / deeper K tiles.
    v7x : 256-wide MXU but only 64 MiB VMEM       -> keep tiles conservative.
    All choices fit inside the default scoped VMEM limit with double-buffered
    inputs, so no vmem_limit_bytes override is needed.
    """
    try:
        kind = jax.devices()[0].device_kind.lower()
    except Exception:
        kind = ""
    if "v5" in kind:
        return 256, 256, 512
    if "v6" in kind:
        return 256, 512, 1024
    return 256, 256, 512  # v7x / unknown


def _choose_tile(dim: int, target: int, align: int) -> tuple[int, int]:
    """Pick (tile, padded_dim) minimizing padding waste.

    * If the whole dim fits in one target tile, use the exact dim as the tile:
      a block dim equal to the full array dim waives the (8,128) rule, so no
      padding / extra XLA pad+slice ops are needed at all.
    * Otherwise search aligned tile sizes and take the largest tile whose
      padded size is within ~6% of the minimum achievable padding (avoids the
      old behaviour of e.g. padding N=520 up to 1024 with a 512 tile).
    """
    if dim <= target:
        return dim, dim
    cands = list(range(align, target + 1, align))
    padded = {t: _round_up(dim, t) for t in cands}
    best = min(padded.values())
    allowed = best + (best >> 4)  # tolerate <=~6.25% extra padding for bigger tiles
    tile = max(t for t in cands if padded[t] <= allowed)
    return tile, padded[tile]


def _make_bmm_kernel(bb: int):
    """Kernel over grid (B//bb, Mp//tm, Np//tn, Kp//tk); K is the last axis."""

    def kernel(a_ref, b_ref, o_ref, acc_ref):
        k = pl.program_id(3)

        @pl.when(k == 0)
        def _init():
            acc_ref[...] = jnp.zeros_like(acc_ref)

        if bb == 1:
            # 2-D MXU matmul on the squeezed per-batch tile.
            acc_ref[...] += jnp.dot(
                a_ref[0], b_ref[0], preferred_element_type=jnp.float32
            )
        else:
            # Small-matrix regime: several batches packed into one grid step.
            acc_ref[...] += jnp.einsum(
                "bmk,bkn->bmn",
                a_ref[...],
                b_ref[...],
                preferred_element_type=jnp.float32,
            )

        @pl.when(k == pl.num_programs(3) - 1)
        def _store():
            if bb == 1:
                o_ref[0] = acc_ref[...].astype(o_ref.dtype)
            else:
                o_ref[...] = acc_ref[...].astype(o_ref.dtype)

    return kernel


def batch_matmul(a: jax.Array, b: jax.Array) -> jax.Array:
    """Pallas TPU implementation of torch.bmm(a, b): (B,M,K) x (B,K,N) -> (B,M,N)."""
    assert a.ndim == 3 and b.ndim == 3, "bmm expects 3-D inputs"
    B, M, K = a.shape
    Bb, Kb, N = b.shape
    assert B == Bb and K == Kb, "shape mismatch for bmm"

    # TODO(synk): integer inputs are accumulated in f32 (may differ from torch.bmm
    # integer semantics); v7x MXU has no integer matmul path at all.
    out_dtype = jnp.result_type(a.dtype, b.dtype)

    # --- tile selection -------------------------------------------------------
    TM, TN, TK = _target_tiles()
    in_item = jnp.dtype(a.dtype).itemsize
    out_item = jnp.dtype(out_dtype).itemsize
    # Sublane alignment scales with packing (f32:8, bf16:16, int8:32); lane is 128.
    align_m = max(8, 32 // in_item)
    tm, Mp = _choose_tile(M, TM, align_m)
    tn, Np = _choose_tile(N, TN, 128)
    tk, Kp = _choose_tile(K, TK, 128)  # 128 covers lane (a) and sublane (b) rules

    # Small-matrix regime: whole per-batch problem fits in one tile, so pack
    # multiple batches per grid step to amortize ~0.35 us/step overhead and
    # keep stores / MXU passes dense. bb must divide B (no batch padding).
    bb = 1
    if tm == Mp == M and tn == Np == N and tk == Kp == K:
        per_batch = (M * K + K * N) * in_item + M * N * (out_item + 4)
        budget = 4 * 1024 * 1024  # bytes of VMEM per (single-buffered) block set
        max_bb = max(1, min(int(budget // max(per_batch, 1)), B, 64))
        for d in range(1, max_bb + 1):
            if B % d == 0:
                bb = d

    # --- zero-pad M/N/K up to tile multiples (zeros don't change the matmul) --
    ap = a if (Mp == M and Kp == K) else jnp.pad(a, ((0, 0), (0, Mp - M), (0, Kp - K)))
    bp = b if (Kp == K and Np == N) else jnp.pad(b, ((0, 0), (0, Kp - K), (0, Np - N)))

    grid = (B // bb, Mp // tm, Np // tn, Kp // tk)
    acc_shape = (tm, tn) if bb == 1 else (bb, tm, tn)

    flops = 2 * B * M * N * K
    bytes_accessed = (
        a.size * a.dtype.itemsize
        + b.size * b.dtype.itemsize
        + B * M * N * jnp.dtype(out_dtype).itemsize
    )

    out = pl.pallas_call(
        _make_bmm_kernel(bb),
        out_shape=jax.ShapeDtypeStruct((B, Mp, Np), out_dtype),
        grid_spec=pltpu.PrefetchScalarGridSpec(
            num_scalar_prefetch=0,
            grid=grid,
            in_specs=[
                pl.BlockSpec((bb, tm, tk), lambda bi, i, j, k: (bi, i, k)),
                pl.BlockSpec((bb, tk, tn), lambda bi, i, j, k: (bi, k, j)),
            ],
            out_specs=pl.BlockSpec((bb, tm, tn), lambda bi, i, j, k: (bi, i, j)),
            scratch_shapes=[pltpu.VMEM(acc_shape, jnp.float32)],
        ),
        compiler_params=pltpu.CompilerParams(
            dimension_semantics=("parallel", "parallel", "parallel", "arbitrary"),
        ),
        cost_estimate=pl.CostEstimate(
            flops=flops, transcendentals=0, bytes_accessed=bytes_accessed
        ),
    )(ap, bp)

    if Mp != M or Np != N:
        out = out[:, :M, :N]
    return out


if __name__ == "__main__":
    key = jax.random.PRNGKey(0)
    ka, kb = jax.random.split(key)

    # Small case (batch-packed, single-tile regime).
    B, M, K, N = 2, 8, 32, 16
    a = jax.random.normal(ka, (B, M, K), dtype=jnp.float32)
    b = jax.random.normal(kb, (B, K, N), dtype=jnp.float32)
    out = jax.block_until_ready(batch_matmul(a, b))
    ref = jnp.einsum("bmk,bkn->bmn", a, b)
    assert out.shape == (B, M, N)
    assert jnp.allclose(out, ref, atol=1e-5, rtol=1e-5), "mismatch vs reference"

    # Larger case exercising M/N/K tiling, K reduction and padding.
    B2, M2, K2, N2 = 3, 384, 1100, 520
    a2 = jax.random.normal(ka, (B2, M2, K2), dtype=jnp.float32)
    b2 = jax.random.normal(kb, (B2, K2, N2), dtype=jnp.float32)
    out2 = jax.block_until_ready(batch_matmul(a2, b2))
    ref2 = jnp.einsum("bmk,bkn->bmn", a2, b2)
    assert jnp.allclose(out2, ref2, atol=1e-3, rtol=1e-3), "mismatch vs reference (tiled)"

    print("KERNEL_OK")
</pallas_src>

<mosaic_0001>
module attributes {stable_mosaic.version = 11 : i64} {
  func.func @kernel(%arg0: i32, %arg1: i32, %arg2: i32, %arg3: i32, %arg4: memref<2x8x32xf32, #tpu.memory_space<vmem>>, %arg5: memref<2x32x16xf32, #tpu.memory_space<vmem>>, %arg6: memref<2x8x16xf32, #tpu.memory_space<vmem>>, %arg7: memref<2x8x16xf32, #tpu.memory_space<vmem>>) attributes {dimension_semantics = [#tpu.dimension_semantics<parallel>, #tpu.dimension_semantics<parallel>, #tpu.dimension_semantics<parallel>, #tpu.dimension_semantics<arbitrary>], iteration_bounds = array<i64: 1, 1, 1, 1>, scalar_prefetch = 0 : i64, scratch_operands = 1 : i64, tpu.core_type = #tpu.core_type<tc>, window_params = [{transform_indices = @transform_0, window_bounds = array<i64: 2, 8, 32>}, {transform_indices = @transform_1, window_bounds = array<i64: 2, 32, 16>}, {transform_indices = @transform_2, window_bounds = array<i64: 2, 8, 16>}]} {
    %c0_i32 = arith.constant 0 : i32
    %0 = arith.cmpi eq, %arg3, %c0_i32 : i32
    %1 = arith.extui %0 : i1 to i32
    %c0_i32_0 = arith.constant 0 : i32
    %2 = arith.cmpi ne, %1, %c0_i32_0 : i32
    scf.if %2 {
      %cst_14 = arith.constant 0.000000e+00 : f32
      %12 = vector.broadcast %cst_14 : f32 to vector<2x8x16xf32>
      %c0_15 = arith.constant 0 : index
      %c0_16 = arith.constant 0 : index
      %c0_17 = arith.constant 0 : index
      %13 = vector.load %arg7[%c0_15, %c0_16, %c0_17] : memref<2x8x16xf32, #tpu.memory_space<vmem>>, vector<2x8x16xf32>
      tpu.vector_store %arg7[%c0_15, %c0_16, %c0_17], %12 {strides = array<i32>} : memref<2x8x16xf32, #tpu.memory_space<vmem>>, vector<2x8x16xf32>,
    } else {
    }
    %c0 = arith.constant 0 : index
    %c0_1 = arith.constant 0 : index
    %c0_2 = arith.constant 0 : index
    %3 = vector.load %arg7[%c0, %c0_1, %c0_2] : memref<2x8x16xf32, #tpu.memory_space<vmem>>, vector<2x8x16xf32>
    %c0_3 = arith.constant 0 : index
    %c0_4 = arith.constant 0 : index
    %c0_5 = arith.constant 0 : index
    %4 = vector.load %arg4[%c0_3, %c0_4, %c0_5] : memref<2x8x32xf32, #tpu.memory_space<vmem>>, vector<2x8x32xf32>
    %c0_6 = arith.constant 0 : index
    %c0_7 = arith.constant 0 : index
    %c0_8 = arith.constant 0 : index
    %5 = vector.load %arg5[%c0_6, %c0_7, %c0_8] : memref<2x32x16xf32, #tpu.memory_space<vmem>>, vector<2x32x16xf32>
    "tpu.trace_start"() <{level = 10 : i32, message = "bmk,bkn->bmn"}> : () -> ()
    %cst = arith.constant dense<0.000000e+00> : vector<2x8x16xf32>
    %6 = tpu.matmul %4, %5, %cst {dimension_numbers = #tpu.dot_dimension_numbers<[2], [1], [1], [2], [0, 0, 0, 1, 1, 2], [0], [0]>} : vector<2x8x32xf32>, vector<2x32x16xf32>, vector<2x8x16xf32> -> vector<2x8x16xf32>
    "tpu.trace_stop"() : () -> ()
    %7 = arith.addf %3, %6 : vector<2x8x16xf32>
    %c0_9 = arith.constant 0 : index
    %c0_10 = arith.constant 0 : index
    %c0_11 = arith.constant 0 : index
    %8 = vector.load %arg7[%c0_9, %c0_10, %c0_11] : memref<2x8x16xf32, #tpu.memory_space<vmem>>, vector<2x8x16xf32>
    tpu.vector_store %arg7[%c0_9, %c0_10, %c0_11], %7 {strides = array<i32>} : memref<2x8x16xf32, #tpu.memory_space<vmem>>, vector<2x8x16xf32>,
    %c0_i32_12 = arith.constant 0 : i32
    %9 = arith.cmpi eq, %arg3, %c0_i32_12 : i32
    %10 = arith.extui %9 : i1 to i32
    %c0_i32_13 = arith.constant 0 : i32
    %11 = arith.cmpi ne, %10, %c0_i32_13 : i32
    scf.if %11 {
      %c0_14 = arith.constant 0 : index
      %c0_15 = arith.constant 0 : index
      %c0_16 = arith.constant 0 : index
      %12 = vector.load %arg7[%c0_14, %c0_15, %c0_16] : memref<2x8x16xf32, #tpu.memory_space<vmem>>, vector<2x8x16xf32>
      %c0_17 = arith.constant 0 : index
      %c0_18 = arith.constant 0 : index
      %c0_19 = arith.constant 0 : index
      %13 = vector.load %arg6[%c0_17, %c0_18, %c0_19] : memref<2x8x16xf32, #tpu.memory_space<vmem>>, vector<2x8x16xf32>
      tpu.vector_store %arg6[%c0_17, %c0_18, %c0_19], %12 {strides = array<i32>} : memref<2x8x16xf32, #tpu.memory_space<vmem>>, vector<2x8x16xf32>,
    } else {
    }
    return
  }
  func.func @transform_0(%arg0: i32, %arg1: i32, %arg2: i32, %arg3: i32) -> (i32, i32, i32) {
    %c0_i32 = arith.constant 0 : i32
    return %arg0, %arg1, %arg3 : i32, i32, i32
  }
  func.func @transform_1(%arg0: i32, %arg1: i32, %arg2: i32, %arg3: i32) -> (i32, i32, i32) {
    %c0_i32 = arith.constant 0 : i32
    return %arg0, %arg3, %arg2 : i32, i32, i32
  }
  func.func @transform_2(%arg0: i32, %arg1: i32, %arg2: i32, %arg3: i32) -> (i32, i32, i32) {
    %c0_i32 = arith.constant 0 : i32
    return %arg0, %arg1, %arg2 : i32, i32, i32
  }
}

</mosaic_0001>

<bundles_post_ra>
// kernel: tpu_custom_call.1
= control target key start
LH: loop header
LB: loop body
LE: loop exit
PB: predicated region body
PF: predicated region fallthrough
CT: control target
= control target key end

     0   :  { %vm16_vm0 = vcmask 130048   ;;  %v282_v3 = vmov 0.0|0.0   ;;  %v283_v8 = vmov 0.0   ;;  %vm284_vm1 = vmmov 0   ;;  %s351_s0 = inlined_call_operand.vmem [shape: f32[2,8,32], index: 0, kind: input, shape index: {}]   ;;  %s352_s1 = inlined_call_operand.vmem [shape: f32[2,32,16], index: 1, kind: input, shape index: {}]   ;;  %s353_s2 = inlined_call_operand.hbm [shape: f32[2,8,16], index: 2, kind: output, shape index: {}]  }
   0x1   :  { %v23_v0 = vld [vmem:[%s352_s1] sm:$0xff]  ;;  %v24_v1 = vld [vmem:[%s352_s1 + $0x8] sm:$0xff]  ;;  %240 = vmatprep.subr.bf16.mxu0 %v282_v3  ;;  %246 = vmatprep.subr.bf16.mxu1 %v282_v3  ;;  %v25_v6 = vld [vmem:[%s352_s1 + $0x10] sm:$0xff]  ;;  %17 = vst.msk [vmem:[#allocation2] sm:$0xff] %vm16_vm0, %v283_v8 }
   0x2   :  { %v27_v2 = vld [vmem:[%s352_s1 + $0x20] sm:$0xff]  ;;  %v241_v4 = vpack.c.bf16 %v24_v1, %v23_v0  ;;  %v28_v5 = vld [vmem:[%s352_s1 + $0x28] sm:$0xff]  ;;  %v26_v7 = vld [vmem:[%s352_s1 + $0x18] sm:$0xff]  ;;  %18 = vst.msk [vmem:[#allocation2 + $0x8] sm:$0xff] %vm16_vm0, %v283_v8  ;;  %226 = vmatprep.mubr.msk.f32.mxu0 %vm284_vm1, %v283_v8  ;;  %237 = vmatprep.mubr.msk.f32.mxu1 %vm284_vm1, %v283_v8 }
   0x3   :  { %v247_v9 = vpack.c.bf16 %v28_v5, %v27_v2  ;;  %v29_v10 = vld [vmem:[%s352_s1 + $0x30] sm:$0xff]  ;;  %v30_v11 = vld [vmem:[%s352_s1 + $0x38] sm:$0xff]  ;;  %v244_v12 = vpack.c.bf16 %v26_v7, %v25_v6 }
   0x4   :  { %242 = vmatpush3.bf16.msra.mxu0 %v241_v4 }
   0x5   :  { %7 = vsyncpa [#allocation4], 0  ;;  %248 = vmatpush3.bf16.msra.mxu1 %v247_v9  ;;  %243 = vmatprep.subr.bf16.mxu0 %v282_v3  ;;  %v250_v13 = vpack.c.bf16 %v30_v11, %v29_v10  ;;  %v21_v14 = vld [vmem:[%s351_s0] sm:$0xff]  ;;  %vm31_vm2 = vcmask 261120   ;;  %v22_v15 = vld [vmem:[%s351_s0 + $0x8] sm:$0xff]  ;;  %s285_s1 = smov [#allocation3]  }
   0x6   :  { %249 = vmatprep.subr.bf16.mxu1 %v282_v3  ;;  %s195_s29 = sshll.u32 %s285_s1, 4  ;;  %s196_s29 = int_to_ptr.vmem [resolvable:$true] %s195_s29 }
   0x7   :  { %s258_s0 = scalar_lea.vmem %s196_s29, 256  ;;  %p263_p1 = scmp.lt.s32.totalorder %s196_s29, %s196_s29 }
   0x8   :  { %245 = vmatpush3.bf16.msra.mxu0 %v244_v12  ;;  %v19_v16 = vld [vmem:[#allocation2] sm:$0xff]  ;;  %p259_p0 = scmp.ne.s32.totalorder %s196_s29, %s258_s0  ;;  %p264_p2 = scmp.lt.s32.totalorder %s258_s0, %s258_s0 }
   0x9   :  { %251 = vmatpush3.bf16.msra.mxu1 %v250_v13  ;;  %v20_v17 = vld [vmem:[#allocation2 + $0x8] sm:$0xff] }
   0xa   :  { %p265_p3 = por %p264_p2, %p263_p1 }
   0xb   :  { %227 = vmatmul.mubr.msk.f32.vlgmr.msra.gmra.mrb[0].mxu0 %vm31_vm2, %v21_v14 }
   0xc   :  { %238 = vmatmul.mubr.msk.f32.vlgmr.msra.gmra.mrb[0].mxu1 %vm31_vm2, %v22_v15  ;;  %p266_p4 = pnand %p265_p3, %p259_p0 }
  0xde   :  { %v101_v18 = vpop.f32.mrb[0].mxu0 }
  0xdf   :  { %v178_v19 = vadd.f32 %v101_v18, %v19_v16  ;;  %v174_v20 = vpop.f32.mrb[0].mxu1  ;;  %v228_v21 = vpop.f32.mrb[1].mxu0 }
  0xe0   :  { %v179_v22 = vadd.f32 %v174_v20, %v20_v17  ;;  %v239_v23 = vpop.f32.mrb[1].mxu1 }
  0xe1   :  { %181 = vst.msk [vmem:[#allocation2] sm:$0xff] %vm16_vm0, %v178_v19 }
  0xe2   :  { %182 = vst.msk [vmem:[#allocation2 + $0x8] sm:$0xff] %vm16_vm0, %v179_v22 }
  0xe8   :  { %v186_v24 = vld [vmem:[#allocation2] sm:$0xff] }
  0xe9   :  { %v187_v25 = vld [vmem:[#allocation2 + $0x8] sm:$0xff]  ;;  %188 = vst.msk [vmem:[#allocation3] sm:$0xff] %vm16_vm0, %v186_v24 }
  0xea   :  { %189 = vst.msk [vmem:[#allocation3 + $0x8] sm:$0xff] %vm16_vm0, %v187_v25 }
  0xeb   :  { %269 = shalt.err (!%p266_p4)
}
  0xec   :  { %s270_s4 = scalar_lea.hbm %s353_s2, 256 }
  0xed   :  { %p271_p5 = scmp.ne.s32.totalorder %s353_s2, %s270_s4  ;;  %p274_p6 = scmp.lt.u32.totalorder %s270_s4, %s353_s2 }
  0xef   :  { %p276_p7 = pnand %p274_p6, %p271_p5 }
  0xf1   :  { %279 = shalt.err (!%p276_p7)
}
  0xf2   :  { %s286_s9 = smov 128   ;;  %s287_s10 = smov 8  }
  0xf3   :  { %201 = dma.vmem_to_hbm [thread:$0]  %s196_s29, 256, %s353_s2, [#allocation4], %s286_s9, %s286_s9, %s287_s10  }
  0xf4   :  { %280 = dma.done.wait [#allocation4], 256  }
  0xf5   :  { %281 = vsyncadd [#allocation4], 4294967040 }
  0xf6   :  { %205 = vsyncpa [#allocation4], 1 }

</bundles_post_ra>
